<compile_context>
chip_gen: v5e
topology: v5e:2x2
jax: 0.10.0
libtpu: 0.0.40
codegen_flags: <defaults>
</compile_context>

<pallas_src>
import functools

import jax
import jax.numpy as jnp
from jax import lax
from jax.experimental import pallas as pl
from jax.experimental.pallas import tpu as pltpu

NG = 3            # number of gates: nn.Linear(input_dim, 3)
NG_PAD = 128      # lane-dense padded gate axis (TPU lane width)
_NEG_BIG = -1e30  # "minus infinity" for padded bias lanes -> exp() underflows to 0 in f32

_X_TILE_CAP_BYTES = 12 << 20  # per-x-tile byte target (review: 8-16 MiB)


# ----------------------------------------------------------------------------- kernels
def _softmax_store(logits, o_ref, approx):
    m = jnp.max(logits, axis=1, keepdims=True)          # numerically stable softmax
    e = jnp.exp(logits - m)                              # padded lanes -> exactly 0
    denom = jnp.sum(e, axis=1, keepdims=True)
    o_ref[...] = (e * pl.reciprocal(denom, approx=approx)).astype(o_ref.dtype)


def gating_kernel_single(x_ref, w_ref, b_ref, o_ref, *, approx):
    # x_ref: (tb, D) native dtype; w_ref: (D, NG_PAD); b_ref: (1, NG_PAD) f32
    logits = jnp.dot(x_ref[...], w_ref[...], preferred_element_type=jnp.float32)
    _softmax_store(logits + b_ref[...], o_ref, approx)


def gating_kernel_ktiled(x_ref, w_ref, b_ref, o_ref, acc_ref, *, d_total, tk, approx):
    # K-tiled path for very large input_dim: accumulate partial x@W in f32 scratch.
    k = pl.program_id(1)

    @pl.when(k == 0)
    def _():
        acc_ref[...] = jnp.zeros_like(acc_ref)

    x = x_ref[...]
    w = w_ref[...]
    if d_total % tk != 0:
        # Ragged last K block: out-of-bounds columns/rows hold undefined data; mask
        # both operands so the OOB region contributes exactly 0 to the accumulator.
        valid = jnp.minimum(d_total - k * tk, tk)
        col = lax.broadcasted_iota(jnp.int32, x.shape, 1)
        x = jnp.where(col < valid, x, jnp.zeros_like(x))
        row = lax.broadcasted_iota(jnp.int32, w.shape, 0)
        w = jnp.where(row < valid, w, jnp.zeros_like(w))
    acc_ref[...] += jnp.dot(x, w, preferred_element_type=jnp.float32)

    @pl.when(k == pl.num_programs(1) - 1)
    def _():
        _softmax_store(acc_ref[...] + b_ref[...], o_ref, approx)


# ----------------------------------------------------------------------------- planning
def _vmem_budget_bytes():
    """Total VMEM the kernel plans to occupy.  Derived from the chip but capped so
    one plan is valid everywhere (v7x has only 64 MiB per TensorCore)."""
    phys = 64 << 20
    try:
        phys = int(pltpu.get_tpu_info().vmem_capacity_bytes)
    except Exception:
        pass
    return max(16 << 20, min(phys, 64 << 20) // 2)   # 32 MiB on current chips


def _plan_tiles(B, D, x_itemsize, out_itemsize):
    budget = _vmem_budget_bytes()
    w_itemsize = x_itemsize          # W is fed to the MXU in x's dtype
    bias_bytes = NG_PAD * 4          # single-buffered f32 bias

    # Tile the input_dim only when the full (D, 128) W tile would eat the budget.
    w_full_bytes = D * NG_PAD * w_itemsize
    if w_full_bytes <= budget // 4:
        tk = D
    else:
        tk = max(128, ((budget // 6) // (NG_PAD * w_itemsize)) // 128 * 128)
        tk = min(tk, D)
    multi_k = tk < D

    w_bufs = 2 if multi_k else 1     # grid-invariant W is single-buffered
    fixed = w_bufs * tk * NG_PAD * w_itemsize + bias_bytes
    per_row = 2 * tk * x_itemsize + 2 * NG_PAD * out_itemsize   # x + out double-buffered
    if multi_k:
        per_row += NG_PAD * 4        # f32 accumulator scratch
    avail = max(budget - fixed, 8 * per_row)
    row_cap = max(8, _X_TILE_CAP_BYTES // max(1, tk * x_itemsize))
    tb = min(avail // per_row, row_cap)
    tb = max(8, (tb // 8) * 8)       # (8,128) sublane constraint
    if tb >= B:
        tb = B                        # full-dim block is always legal

    usage = (w_bufs * tk * NG_PAD * w_itemsize + bias_bytes
             + 2 * tb * tk * x_itemsize + 2 * tb * NG_PAD * out_itemsize
             + (tb * NG_PAD * 4 if multi_k else 0))
    vmem_limit = min(max(usage + (8 << 20), 16 << 20), 48 << 20)
    return tb, tk, multi_k, vmem_limit


# ----------------------------------------------------------------------------- wrapper
def gating_network_pallas(x, w, b, *, out_dtype=jnp.float32, approx_reciprocal=False,
                          tile_b=None, tile_k=None):
    """Pallas path.  x: (B, D), w: (D, 3), b: (3,) -> (B, 3) softmax gate weights."""
    B, D = x.shape
    assert w.shape == (D, NG) and b.shape == (NG,)
    out_dtype = jnp.dtype(out_dtype)

    tb, tk, multi_k, vmem_limit = _plan_tiles(B, D, x.dtype.itemsize, out_dtype.itemsize)
    if tile_b is not None:               # testing hook (must be a multiple of 8 if < B)
        tb = min(tile_b, B)
    if tile_k is not None:               # testing hook (must be a multiple of 128 if < D)
        tk = min(tile_k, D)
        multi_k = tk < D
    nb = pl.cdiv(B, tb)
    nk = pl.cdiv(D, tk)

    # Lane-dense gate axis: zero-pad W columns; padded bias lanes get a large negative
    # so exp -> 0 and the softmax denominator is unchanged.  Bias stays f32.
    w_p = jnp.pad(w.astype(x.dtype), ((0, 0), (0, NG_PAD - NG)))
    b_p = jnp.full((1, NG_PAD), _NEG_BIG, dtype=jnp.float32)
    b_p = b_p.at[0, :NG].set(b.astype(jnp.float32))

    cost = pl.CostEstimate(
        flops=2 * B * D * NG_PAD,
        transcendentals=B * NG_PAD,
        bytes_accessed=(B * D * x.dtype.itemsize            # x read
                        + D * NG_PAD * x.dtype.itemsize     # padded W read
                        + NG_PAD * 4                          # f32 bias read
                        + B * NG_PAD * out_dtype.itemsize),  # padded output write
    )

    resident = pl.Buffered(1)   # grid-invariant operands: no useless double buffer
    if not multi_k:
        grid = (nb,)
        in_specs = [
            pl.BlockSpec((tb, D), lambda i: (i, 0)),                                   # x
            pl.BlockSpec((D, NG_PAD), lambda i: (0, 0), pipeline_mode=resident),       # W
            pl.BlockSpec((1, NG_PAD), lambda i: (0, 0), pipeline_mode=resident),       # b
        ]
        out_specs = pl.BlockSpec((tb, NG_PAD), lambda i: (i, 0))
        scratch_shapes = []
        kernel = functools.partial(gating_kernel_single, approx=approx_reciprocal)
        dims = ("parallel",)
    else:
        grid = (nb, nk)
        in_specs = [
            pl.BlockSpec((tb, tk), lambda i, k: (i, k)),                               # x
            pl.BlockSpec((tk, NG_PAD), lambda i, k: (k, 0)),                           # W
            pl.BlockSpec((1, NG_PAD), lambda i, k: (0, 0), pipeline_mode=resident),    # b
        ]
        out_specs = pl.BlockSpec((tb, NG_PAD), lambda i, k: (i, 0))
        scratch_shapes = [pltpu.VMEM((tb, NG_PAD), jnp.float32)]
        kernel = functools.partial(gating_kernel_ktiled, d_total=D, tk=tk,
                                   approx=approx_reciprocal)
        dims = ("parallel", "arbitrary")

    out = pl.pallas_call(
        kernel,
        out_shape=jax.ShapeDtypeStruct((B, NG_PAD), out_dtype),
        grid_spec=pltpu.PrefetchScalarGridSpec(
            num_scalar_prefetch=0,
            grid=grid,
            in_specs=in_specs,
            out_specs=out_specs,
            scratch_shapes=scratch_shapes,
        ),
        compiler_params=pltpu.CompilerParams(
            dimension_semantics=dims,            # batch tiles shard across TCs (v7x)
            vmem_limit_bytes=vmem_limit,
        ),
        cost_estimate=cost,
    )(x, w_p, b_p)

    # Ragged-batch edge rows (if any) and padded lanes are garbage by design; they are
    # sliced away here and must never be asserted on.
    return out[:, :NG]


def _pallas_crossover_elements():
    # Crossover vs fused XLA moves to larger B*D with higher HBM bandwidth (v7x).
    thresh = 1 << 20
    try:
        chip = str(getattr(pltpu.get_tpu_info(), "chip_version", ""))
        if "7" in chip:
            thresh = 4 << 20
    except Exception:
        pass
    return thresh


def gating_network(x, w, b, *, min_elements_for_pallas=None):
    """Dispatcher: tiny problems are pure launch/step overhead in Pallas — let XLA
    fuse them; large batches go through the tiled Pallas kernel."""
    B, D = x.shape
    if min_elements_for_pallas is None:
        min_elements_for_pallas = _pallas_crossover_elements()
    if B * D < min_elements_for_pallas:
        return jax.nn.softmax(x.astype(jnp.float32) @ w.astype(jnp.float32)
                              + b.astype(jnp.float32)[None, :], axis=1)
    return gating_network_pallas(x, w, b)


def reference(x, w, b):
    logits = x.astype(jnp.float32) @ w.astype(jnp.float32) + b.astype(jnp.float32)[None, :]
    m = jnp.max(logits, axis=1, keepdims=True)
    e = jnp.exp(logits - m)
    return e / jnp.sum(e, axis=1, keepdims=True)


if __name__ == "__main__":
    key = jax.random.PRNGKey(0)

    # --- small shape consistent with the module: batch=8, input_dim=32 ---
    B, D = 8, 32
    kx, kw, kb = jax.random.split(key, 3)
    x = jax.random.normal(kx, (B, D), dtype=jnp.float32)
    bound = 1.0 / (D ** 0.5)  # nn.Linear default init range
    w = jax.random.uniform(kw, (D, NG), dtype=jnp.float32, minval=-bound, maxval=bound)
    b = jax.random.uniform(kb, (NG,), dtype=jnp.float32, minval=-bound, maxval=bound)

    out = jax.block_until_ready(gating_network_pallas(x, w, b))
    ref = reference(x, w, b)
    assert out.shape == (B, NG)
    assert jnp.allclose(out, ref, atol=1e-5, rtol=1e-5), "single-K path mismatch"
    assert jnp.allclose(jnp.sum(out, axis=1), jnp.ones((B,)), atol=1e-5)

    # --- exercise the ragged-batch + K-tiled accumulator path (still small) ---
    B2, D2 = 20, 200
    kx2, kw2, kb2 = jax.random.split(jax.random.PRNGKey(1), 3)
    x2 = jax.random.normal(kx2, (B2, D2), dtype=jnp.float32)
    bound2 = 1.0 / (D2 ** 0.5)
    w2 = jax.random.uniform(kw2, (D2, NG), dtype=jnp.float32, minval=-bound2, maxval=bound2)
    b2 = jax.random.uniform(kb2, (NG,), dtype=jnp.float32, minval=-bound2, maxval=bound2)
    out2 = jax.block_until_ready(gating_network_pallas(x2, w2, b2, tile_b=8, tile_k=128))
    assert jnp.allclose(out2, reference(x2, w2, b2), atol=1e-5, rtol=1e-5), "K-tiled mismatch"

    # --- dispatcher (routes this tiny shape to fused XLA) ---
    out3 = jax.block_until_ready(gating_network(x, w, b))
    assert jnp.allclose(out3, ref, atol=1e-5, rtol=1e-5)

    print("KERNEL_OK")
</pallas_src>

<mosaic_0001>
module attributes {stable_mosaic.version = 11 : i64} {
  func.func @gating_kernel_single(%arg0: i32, %arg1: memref<8x32xf32, #tpu.memory_space<vmem>>, %arg2: memref<32x128xf32, #tpu.memory_space<vmem>>, %arg3: memref<1x128xf32, #tpu.memory_space<vmem>>, %arg4: memref<8x128xf32, #tpu.memory_space<vmem>>) attributes {dimension_semantics = [#tpu.dimension_semantics<parallel>], iteration_bounds = array<i64: 1>, scalar_prefetch = 0 : i64, scratch_operands = 0 : i64, tpu.core_type = #tpu.core_type<tc>, window_params = [{transform_indices = @transform_0, window_bounds = array<i64: 8, 32>}, {pipeline_mode = #tpu.pipeline_mode<synchronous>, transform_indices = @transform_1, window_bounds = array<i64: 32, 128>}, {pipeline_mode = #tpu.pipeline_mode<synchronous>, transform_indices = @transform_2, window_bounds = array<i64: 1, 128>}, {transform_indices = @transform_3, window_bounds = array<i64: 8, 128>}]} {
    %c0 = arith.constant 0 : index
    %c0_0 = arith.constant 0 : index
    %0 = vector.load %arg1[%c0, %c0_0] : memref<8x32xf32, #tpu.memory_space<vmem>>, vector<8x32xf32>
    %c0_1 = arith.constant 0 : index
    %c0_2 = arith.constant 0 : index
    %1 = vector.load %arg2[%c0_1, %c0_2] : memref<32x128xf32, #tpu.memory_space<vmem>>, vector<32x128xf32>
    %cst = arith.constant dense<0.000000e+00> : vector<8x128xf32>
    %2 = tpu.matmul %0, %1, %cst {dimension_numbers = #tpu.dot_dimension_numbers<[1], [0], [0], [1], [0, 0, 1, 1], [], []>} : vector<8x32xf32>, vector<32x128xf32>, vector<8x128xf32> -> vector<8x128xf32>
    %c0_3 = arith.constant 0 : index
    %c0_4 = arith.constant 0 : index
    %3 = vector.load %arg3[%c0_3, %c0_4] : memref<1x128xf32, #tpu.memory_space<vmem>>, vector<1x128xf32>
    %4 = vector.broadcast %3 : vector<1x128xf32> to vector<8x128xf32>
    %5 = arith.addf %2, %4 : vector<8x128xf32>
    %cst_5 = arith.constant dense<0xFF800000> : vector<8xf32>
    %6 = vector.multi_reduction <maximumf>, %5, %cst_5 [1] : vector<8x128xf32> to vector<8xf32>
    %7 = vector.shape_cast %6 : vector<8xf32> to vector<8x1xf32>
    %8 = vector.broadcast %7 : vector<8x1xf32> to vector<8x128xf32>
    %9 = arith.subf %5, %8 : vector<8x128xf32>
    %10 = math.exp %9 : vector<8x128xf32>
    %cst_6 = arith.constant dense<0.000000e+00> : vector<8xf32>
    %11 = vector.multi_reduction <add>, %10, %cst_6 [1] : vector<8x128xf32> to vector<8xf32>
    %12 = vector.shape_cast %11 : vector<8xf32> to vector<8x1xf32>
    %13 = tpu.reciprocal %12 : vector<8x1xf32> -> vector<8x1xf32>
    %14 = vector.broadcast %13 : vector<8x1xf32> to vector<8x128xf32>
    %15 = arith.mulf %10, %14 : vector<8x128xf32>
    %c0_7 = arith.constant 0 : index
    %c0_8 = arith.constant 0 : index
    %16 = vector.load %arg4[%c0_7, %c0_8] : memref<8x128xf32, #tpu.memory_space<vmem>>, vector<8x128xf32>
    tpu.vector_store %arg4[%c0_7, %c0_8], %15 {strides = array<i32>} : memref<8x128xf32, #tpu.memory_space<vmem>>, vector<8x128xf32>,
    return
  }
  func.func @transform_0(%arg0: i32) -> (i32, i32) {
    %c0_i32 = arith.constant 0 : i32
    %c0_i32_0 = arith.constant 0 : i32
    return %arg0, %c0_i32 : i32, i32
  }
  func.func @transform_1(%arg0: i32) -> (i32, i32) {
    %c0_i32 = arith.constant 0 : i32
    %c0_i32_0 = arith.constant 0 : i32
    %c0_i32_1 = arith.constant 0 : i32
    return %c0_i32, %c0_i32_0 : i32, i32
  }
  func.func @transform_2(%arg0: i32) -> (i32, i32) {
    %c0_i32 = arith.constant 0 : i32
    %c0_i32_0 = arith.constant 0 : i32
    %c0_i32_1 = arith.constant 0 : i32
    return %c0_i32, %c0_i32_0 : i32, i32
  }
  func.func @transform_3(%arg0: i32) -> (i32, i32) {
    %c0_i32 = arith.constant 0 : i32
    %c0_i32_0 = arith.constant 0 : i32
    return %arg0, %c0_i32 : i32, i32
  }
}

</mosaic_0001>

<bundles_post_ra>
// kernel: tpu_custom_call.1
= control target key start
LH: loop header
LB: loop body
LE: loop exit
PB: predicated region body
PF: predicated region fallthrough
CT: control target
= control target key end

     0   :  { %8 = vsyncpa [#allocation3], 0  ;;  %s245_s0 = inlined_call_operand.hbm [shape: f32[8,32], index: 0, kind: input, shape index: {}]   ;;  %s246_s1 = inlined_call_operand.hbm [shape: f32[32,128], index: 1, kind: input, shape index: {}]   ;;  %s247_s2 = inlined_call_operand.vmem [shape: f32[1,128], index: 2, kind: input, shape index: {}]   ;;  %s248_s3 = inlined_call_operand.hbm [shape: f32[8,128], index: 3, kind: output, shape index: {}]  }
   0x1   :  { %9 = vsyncpa [#allocation6], 0 }
   0x2   :  { %10 = vsyncpa [#allocation4], 0  ;;  %s16_s14 = sshll.u32 %s245_s0, 4  ;;  %s208_s15 = smov [#allocation2]   ;;  %s17_s14 = int_to_ptr.hbm [resolvable:$true] %s16_s14 }
   0x3   :  { %s18_s16 = sshll.u32 %s208_s15, 4  ;;  %s26_s19 = sshll.u32 %s246_s1, 4  ;;  %s19_s16 = int_to_ptr.vmem [resolvable:$true] %s18_s16  ;;  %s27_s19 = int_to_ptr.hbm [resolvable:$true] %s26_s19 }
   0x4   :  { %21 = dma.hbm_to_vmem [thread:$0]  %s17_s14, 128, %s19_s16, [#allocation3]  }
   0x5   :  { %s209_s20 = smov [#allocation5]   ;;  %s210_s22 = smov 128  }
   0x6   :  { %s28_s21 = sshll.u32 %s209_s20, 4  ;;  %s211_s23 = smov 8   ;;  %s29_s21 = int_to_ptr.vmem [resolvable:$true] %s28_s21 }
   0x7   :  { %34 = dma.hbm_to_vmem [thread:$0]  %s27_s19, 512, %s29_s21, [#allocation6], %s210_s22, %s210_s22, %s211_s23  }
   0x8   :  { %202 = dma.done.wait [#allocation3], 128  }
   0x9   :  { %203 = vsyncadd [#allocation3], 4294967168 }
   0xa   :  { %204 = dma.done.wait [#allocation6], 512  }
   0xb   :  { %205 = vsyncadd [#allocation6], 4294966784  ;;  %v49_v0 = vld [vmem:[#allocation5 + $0x18] sm:$0xff]  ;;  %v48_v1 = vld [vmem:[#allocation5 + $0x10] sm:$0xff]  ;;  %vm54_vm0 = vcmask 261120   ;;  %s108_s27 = sshll.u32 %s248_s3, 4  ;;  %s109_s27 = int_to_ptr.hbm [resolvable:$true] %s108_s27 }
   0xc   :  { %70 = vmatpush.msra.mxu0 %v49_v0  ;;  %v47_v2 = vld [vmem:[#allocation5 + $0x8] sm:$0xff]  ;;  %v46_v3 = vld [vmem:[#allocation5] sm:$0xff]  ;;  %v45_v4 = vld [vmem:[#allocation2] sm:$0xff] }
   0xd   :  { %v125_v5 = vld [vmem:[%s247_s2] ss:$0 sm:$0xff]  ;;  %s212_s2 = smov [#allocation7]  }
   0xe   :  { %71 = vmatpush.msra.mxu0 %v48_v1  ;;  %s106_s24 = sshll.u32 %s212_s2, 4  ;;  %s107_s24 = int_to_ptr.vmem [resolvable:$true] %s106_s24 }
  0x10   :  { %72 = vmatpush.msra.mxu0 %v47_v2 }
  0x12   :  { %73 = vmatpush.msra.mxu0 %v46_v3 }
  0x13   :  { %119 = vmatmul.msk.f32.vlgmr.msra.gmra.mxu0 %vm54_vm0, %v45_v4 }
  0x90   :  { %v75_v6 = vpop.f32.mrf.mxu0 }
  0x91   :  { %v76_v7 = vadd.f32 %v125_v5, %v75_v6 }
  0x93   :  { %78 = vmax.xlane.f32.xlu0 %v76_v7 }
 0x106   :  { %v79_v8 = vpop.xlane.xlu0 %78 }
 0x107   :  { %v80_v9 = vsub.f32 %v76_v7, %v79_v8 }
 0x109   :  { %v81_v10 = vmul.f32 1.442695, %v80_v9 }
 0x10b   :  { %126 = vpow2.f32 %v81_v10 }
 0x111   :  { %v127_v11 = vpop.eup %126 }
 0x112   :  { %83 = vadd.xlane.f32.xlu0 %v127_v11 }
 0x185   :  { %v84_v12 = vpop.xlane.xlu0 %83 }
 0x186   :  { %128 = vrcp.f32 %v84_v12  ;;  %v96_v16 = vand.u32 2147483648, %v84_v12  ;;  %v94_v18 = vand.u32 2147483647, %v84_v12  ;;  %vm90_vm2 = vweird.f32 %v84_v12 }
 0x188   :  { %v97_v20 = vor.u32 1.1754944e-38, %v96_v16  ;;  %vm95_vm4 = vcmp.eq.f32.partialorder %v94_v18, 8.507059e+37 }
 0x18c   :  { %v129_v13 = vpop.eup %128 }
 0x18d   :  { %v86_v14 = vmul.f32 %v129_v13, %v84_v12  ;;  %vm91_vm1 = vweird.f32 %v129_v13 }
 0x18e   :  { %vm92_vm3 = vmor %vm90_vm2, %vm91_vm1 }
 0x18f   :  { %v87_v15 = vsub.f32 1.0, %v86_v14 }
 0x191   :  { %v88_v17 = vmul.f32 %v129_v13, %v87_v15 }
 0x193   :  { %v89_v19 = vadd.f32 %v129_v13, %v88_v17 }
 0x195   :  { %v93_v21 = vsel %vm92_vm3, %v129_v13, %v89_v19 }
 0x196   :  { %v98_v22 = vsel %vm95_vm4, %v97_v20, %v93_v21 }
 0x197   :  { %v99_v23 = vmul.f32 %v127_v11, %v98_v22 }
 0x199   :  { %100 = vst [vmem:[#allocation7] sm:$0xff] %v99_v23 }
 0x19a   :  { %111 = dma.vmem_to_hbm [thread:$0]  %s107_s24, 128, %s109_s27, [#allocation4]  }
 0x19b   :  { %206 = dma.done.wait [#allocation4], 128  }
 0x19c   :  { %207 = vsyncadd [#allocation4], 4294967168 }
 0x19d   :  { %116 = vsyncpa [#allocation3], 1 }
 0x19e   :  { %117 = vsyncpa [#allocation6], 1 }
 0x19f   :  { %118 = vsyncpa [#allocation4], 1 }

</bundles_post_ra>
